<compile_context>
chip_gen: v5e
topology: v5e:2x2
jax: 0.10.0
libtpu: 0.0.40
codegen_flags: <defaults>
</compile_context>

<pallas_src>
import math

import jax
import jax.numpy as jnp
from jax.experimental import pallas as pl
from jax.experimental.pallas import tpu as pltpu


LIN_PAD = 256  # 220 -> next multiple of 128 (exact zero padding)


def _leaky(v):
    # nn.LeakyReLU(0.01): slope > 0, so max(v, 0.01*v) is exact (mul+max).
    return jnp.maximum(v, 0.01 * v)


def _round_up(x, m):
    return ((x + m - 1) // m) * m


def disc_kernel(x_ref, w1_ref, b1_ref, w2_ref, b2_ref, w3_ref, b3_ref,
                wl1_ref, bl1_ref, wl2_ref, bl2_ref, wl3_ref, bl3_ref, out_ref):
    def mm(a_bf16, w_ref, b_ref):
        # bf16 MXU inputs, fp32 accumulation, fp32 bias epilogue.
        return jnp.dot(a_bf16, w_ref[...],
                       preferred_element_type=jnp.float32) + b_ref[...]

    def act_bf16(v):
        # fp32 LeakyReLU, then store the inter-layer activation as bf16:
        # halves intermediate VMEM traffic; next layer's MXU wants bf16 anyway.
        return _leaky(v).astype(jnp.bfloat16)

    # conv1/conv2/conv3 (center tap of 'same' 5-tap conv at L == 1) + LeakyReLU
    h = act_bf16(mm(x_ref[...], w1_ref, b1_ref))
    h = act_bf16(mm(h, w2_ref, b2_ref))
    h = act_bf16(mm(h, w3_ref, b3_ref))
    # flatten is implicit: activations are already (block_B, 128)
    # linear1 (padded to 256) + LeakyReLU
    h = act_bf16(mm(h, wl1_ref, bl1_ref))
    # linear2 (padded to 256) + ReLU (kept fp32: it feeds the VPU, not the MXU)
    h = jnp.maximum(mm(h, wl2_ref, bl2_ref), 0.0)
    # linear3: N=1 -> elementwise multiply + lane reduction (XLU), not the MXU
    out = jnp.sum(h * wl3_ref[...], axis=-1, keepdims=True) + bl3_ref[...]
    out_ref[...] = out.astype(out_ref.dtype)


def prepare_params(params):
    """One-time transform of PyTorch-layout params into kernel-ready arrays."""
    (w1, b1), (w2, b2), (w3, b3), (l1w, l1b), (l2w, l2b), (l3w, l3b) = params

    def bf(w):
        return w.astype(jnp.bfloat16)

    # Conv weights: center tap, transposed to (Cin, Cout); bf16 for the MXU.
    w1c = bf(w1[:, :, 2].T)
    w2c = bf(w2[:, :, 2].T)
    w3c = bf(w3[:, :, 2].T)
    b1r = b1.reshape(1, -1).astype(jnp.float32)
    b2r = b2.reshape(1, -1).astype(jnp.float32)
    b3r = b3.reshape(1, -1).astype(jnp.float32)

    # Linear weights: (out, in) -> (in, out), zero-padded 220 -> 256 (exact).
    wl1 = jnp.zeros((128, LIN_PAD), jnp.float32).at[:, :220].set(l1w.T)
    wl2 = jnp.zeros((LIN_PAD, LIN_PAD), jnp.float32).at[:220, :220].set(l2w.T)
    wl3 = jnp.zeros((1, LIN_PAD), jnp.float32).at[:, :220].set(l3w)  # f32 (VPU path)
    bl1 = jnp.zeros((1, LIN_PAD), jnp.float32).at[:, :220].set(l1b)
    bl2 = jnp.zeros((1, LIN_PAD), jnp.float32).at[:, :220].set(l2b)
    bl3 = l3b.reshape(1, 1).astype(jnp.float32)

    return (w1c, b1r, w2c, b2r, w3c, b3r,
            bf(wl1), bl1, bf(wl2), bl2, wl3, bl3)


def _tile_batch(B, block_b):
    """Balanced, generation-aware batch tiling: pick the step count first,
    then derive the tile, so a small remainder never costs a whole
    (mostly zero-padded) extra grid step."""
    n_steps = max(pl.cdiv(B, block_b), 1)
    kind = jax.devices()[0].device_kind.lower()
    if ("v7" in kind or "7x" in kind) and B >= 16:
        # v7x megacore: dimension_semantics=("parallel",) only shards across
        # the 2 TensorCores if the grid has >= 2 (ideally even) steps.
        n_steps = max(n_steps, 2)
        n_steps += n_steps % 2
    bb = _round_up(pl.cdiv(B, n_steps), 8)
    return bb, n_steps


def discriminator_forward(x, prepped, block_b=1024):
    """x: (B, real_tick + 1, L) in PyTorch NCL layout; L must be 1.

    block_b: batch-tile upper bound. On single-core v5e/v6e with very large B,
    sweeping 1024-2048 trades per-step overhead against (tiny) VMEM use.
    """
    B, cin, L = x.shape
    assert L == 1, "the flatten in the reference module requires length == 1"
    # bf16 input: halves the only per-step input DMA; numerically identical to
    # the in-kernel bf16 cast the first matmul performs anyway.
    x2 = x[:, :, 0].astype(jnp.bfloat16)          # (B, Cin), channels-last

    bb, n_steps = _tile_batch(B, block_b)
    b_pad = n_steps * bb
    if b_pad != B:
        x2 = jnp.pad(x2, ((0, b_pad - B), (0, 0)))
    grid = (n_steps,)

    def const_spec(a):
        # Whole array resident in VMEM; constant block index => no re-DMA.
        # (A 1-deep buffer would drop the redundant second copy, but the whole
        #  weight set is ~0.5 MiB so the default double-buffer is harmless.)
        return pl.BlockSpec(a.shape, lambda i, _nd=a.ndim: (0,) * _nd)

    in_specs = ([pl.BlockSpec((bb, cin), lambda i: (i, 0))]
                + [const_spec(a) for a in prepped])
    out_specs = pl.BlockSpec((bb, 1), lambda i: (i, 0))

    flops = 2 * b_pad * (cin * 32 + 32 * 64 + 64 * 128
                         + 128 * LIN_PAD + LIN_PAD * LIN_PAD + LIN_PAD)
    bytes_accessed = (x2.size * x2.dtype.itemsize + b_pad * 4
                      + sum(int(a.size) * a.dtype.itemsize for a in prepped))
    cost = pl.CostEstimate(flops=flops, transcendentals=0,
                           bytes_accessed=bytes_accessed)

    out = pl.pallas_call(
        disc_kernel,
        out_shape=jax.ShapeDtypeStruct((b_pad, 1), jnp.float32),
        grid=grid,
        in_specs=in_specs,
        out_specs=out_specs,
        compiler_params=pltpu.CompilerParams(
            dimension_semantics=("parallel",),      # megacore on v7x
            # Actual footprint is a few MiB even at bb=2048; do not reserve
            # half of v7x's 64 MiB VMEM for it.
            vmem_limit_bytes=16 * 1024 * 1024,
        ),
        cost_estimate=cost,
    )(x2, *prepped)
    return out[:B]


def init_params(key, real_tick):
    """Deterministic init mirroring PyTorch default (uniform +-1/sqrt(fan_in))."""
    c_in = real_tick + 1
    shapes = [
        ((32, c_in, 5), (32,)),     # conv1
        ((64, 32, 5), (64,)),       # conv2
        ((128, 64, 5), (128,)),     # conv3
        ((220, 128), (220,)),       # linear1
        ((220, 220), (220,)),       # linear2
        ((1, 220), (1,)),           # linear3
    ]
    params = []
    for ws, bs in shapes:
        key, kw, kb = jax.random.split(key, 3)
        fan_in = math.prod(ws[1:])
        bound = 1.0 / math.sqrt(fan_in)
        w = jax.random.uniform(kw, ws, jnp.float32, -bound, bound)
        b = jax.random.uniform(kb, bs, jnp.float32, -bound, bound)
        params.append((w, b))
    return params


# ----- plain-JAX reference (full 5-tap 'same' Conv1d, fp32) for validation --
def _leaky_ref(v):
    return jnp.where(v > 0, v, 0.01 * v)


def _conv1d_same_ref(x, w, b):
    # x: (B, Cin, L), w: (Cout, Cin, K), stride 1, padding='same'
    K, L = w.shape[2], x.shape[2]
    pad = (K - 1) // 2
    xp = jnp.pad(x, ((0, 0), (0, 0), (pad, K - 1 - pad)))
    y = sum(jnp.einsum('bcl,oc->bol', xp[:, :, k:k + L], w[:, :, k]) for k in range(K))
    return y + b[None, :, None]


def reference_forward(x, params):
    (w1, b1), (w2, b2), (w3, b3), (l1w, l1b), (l2w, l2b), (l3w, l3b) = params
    h = _leaky_ref(_conv1d_same_ref(x, w1, b1))
    h = _leaky_ref(_conv1d_same_ref(h, w2, b2))
    h = _leaky_ref(_conv1d_same_ref(h, w3, b3))
    h = h.reshape(h.shape[0], h.shape[1])
    h = _leaky_ref(h @ l1w.T + l1b)
    h = jnp.maximum(h @ l2w.T + l2b, 0.0)
    return h @ l3w.T + l3b


if __name__ == "__main__":
    real_tick = 7          # -> conv1 in_channels = 8
    batch = 4
    key = jax.random.PRNGKey(0)
    kx, kp = jax.random.split(key)

    x = jax.random.normal(kx, (batch, real_tick + 1, 1), dtype=jnp.float32)
    params = init_params(kp, real_tick)
    prepped = prepare_params(params)        # one-time weight transform

    out = discriminator_forward(x, prepped)
    out = jax.block_until_ready(out)

    ref = reference_forward(x, params)
    assert out.shape == (batch, 1), out.shape
    # bf16 MXU inputs / intermediates => validate with a tolerance scaled to
    # the output range.
    err = float(jnp.max(jnp.abs(out - ref)))
    scale = float(jnp.maximum(1.0, jnp.max(jnp.abs(ref))))
    assert err <= 3e-2 * scale, (err, scale, out, ref)

    print("KERNEL_OK")
</pallas_src>

<mosaic_0001>
module attributes {stable_mosaic.version = 11 : i64} {
  func.func @disc_kernel(%arg0: i32, %arg1: memref<8x8xbf16, #tpu.memory_space<vmem>>, %arg2: memref<8x32xbf16, #tpu.memory_space<vmem>>, %arg3: memref<1x32xf32, #tpu.memory_space<vmem>>, %arg4: memref<32x64xbf16, #tpu.memory_space<vmem>>, %arg5: memref<1x64xf32, #tpu.memory_space<vmem>>, %arg6: memref<64x128xbf16, #tpu.memory_space<vmem>>, %arg7: memref<1x128xf32, #tpu.memory_space<vmem>>, %arg8: memref<128x256xbf16, #tpu.memory_space<vmem>>, %arg9: memref<1x256xf32, #tpu.memory_space<vmem>>, %arg10: memref<256x256xbf16, #tpu.memory_space<vmem>>, %arg11: memref<1x256xf32, #tpu.memory_space<vmem>>, %arg12: memref<1x256xf32, #tpu.memory_space<vmem>>, %arg13: memref<1x1xf32, #tpu.memory_space<vmem>>, %arg14: memref<8x1xf32, #tpu.memory_space<vmem>>) attributes {dimension_semantics = [#tpu.dimension_semantics<parallel>], iteration_bounds = array<i64: 1>, scalar_prefetch = 0 : i64, scratch_operands = 0 : i64, tpu.core_type = #tpu.core_type<tc>, window_params = [{transform_indices = @transform_0, window_bounds = array<i64: 8, 8>}, {pipeline_mode = #tpu.pipeline_mode<synchronous>, transform_indices = @transform_1, window_bounds = array<i64: 8, 32>}, {pipeline_mode = #tpu.pipeline_mode<synchronous>, transform_indices = @transform_2, window_bounds = array<i64: 1, 32>}, {pipeline_mode = #tpu.pipeline_mode<synchronous>, transform_indices = @transform_3, window_bounds = array<i64: 32, 64>}, {pipeline_mode = #tpu.pipeline_mode<synchronous>, transform_indices = @transform_4, window_bounds = array<i64: 1, 64>}, {pipeline_mode = #tpu.pipeline_mode<synchronous>, transform_indices = @transform_5, window_bounds = array<i64: 64, 128>}, {pipeline_mode = #tpu.pipeline_mode<synchronous>, transform_indices = @transform_6, window_bounds = array<i64: 1, 128>}, {pipeline_mode = #tpu.pipeline_mode<synchronous>, transform_indices = @transform_7, window_bounds = array<i64: 128, 256>}, {pipeline_mode = #tpu.pipeline_mode<synchronous>, transform_indices = @transform_8, window_bounds = array<i64: 1, 256>}, {pipeline_mode = #tpu.pipeline_mode<synchronous>, transform_indices = @transform_9, window_bounds = array<i64: 256, 256>}, {pipeline_mode = #tpu.pipeline_mode<synchronous>, transform_indices = @transform_10, window_bounds = array<i64: 1, 256>}, {pipeline_mode = #tpu.pipeline_mode<synchronous>, transform_indices = @transform_11, window_bounds = array<i64: 1, 256>}, {pipeline_mode = #tpu.pipeline_mode<synchronous>, transform_indices = @transform_12, window_bounds = array<i64: 1, 1>}, {transform_indices = @transform_13, window_bounds = array<i64: 8, 1>}]} {
    %c0 = arith.constant 0 : index
    %c0_0 = arith.constant 0 : index
    %0 = vector.load %arg1[%c0, %c0_0] : memref<8x8xbf16, #tpu.memory_space<vmem>>, vector<8x8xbf16>
    %c0_1 = arith.constant 0 : index
    %c0_2 = arith.constant 0 : index
    %1 = vector.load %arg2[%c0_1, %c0_2] : memref<8x32xbf16, #tpu.memory_space<vmem>>, vector<8x32xbf16>
    %cst = arith.constant dense<0.000000e+00> : vector<8x32xf32>
    %2 = tpu.matmul %0, %1, %cst {dimension_numbers = #tpu.dot_dimension_numbers<[1], [0], [0], [1], [0, 0, 1, 1], [], []>} : vector<8x8xbf16>, vector<8x32xbf16>, vector<8x32xf32> -> vector<8x32xf32>
    %c0_3 = arith.constant 0 : index
    %c0_4 = arith.constant 0 : index
    %3 = vector.load %arg3[%c0_3, %c0_4] : memref<1x32xf32, #tpu.memory_space<vmem>>, vector<1x32xf32>
    %4 = vector.broadcast %3 : vector<1x32xf32> to vector<8x32xf32>
    %5 = arith.addf %2, %4 : vector<8x32xf32>
    %cst_5 = arith.constant 0.00999999977 : f32
    %6 = vector.broadcast %cst_5 : f32 to vector<8x32xf32>
    %7 = arith.mulf %6, %5 : vector<8x32xf32>
    %8 = arith.maximumf %5, %7 : vector<8x32xf32>
    %9 = arith.truncf %8 : vector<8x32xf32> to vector<8x32xbf16>
    %c0_6 = arith.constant 0 : index
    %c0_7 = arith.constant 0 : index
    %10 = vector.load %arg4[%c0_6, %c0_7] : memref<32x64xbf16, #tpu.memory_space<vmem>>, vector<32x64xbf16>
    %cst_8 = arith.constant dense<0.000000e+00> : vector<8x64xf32>
    %11 = tpu.matmul %9, %10, %cst_8 {dimension_numbers = #tpu.dot_dimension_numbers<[1], [0], [0], [1], [0, 0, 1, 1], [], []>} : vector<8x32xbf16>, vector<32x64xbf16>, vector<8x64xf32> -> vector<8x64xf32>
    %c0_9 = arith.constant 0 : index
    %c0_10 = arith.constant 0 : index
    %12 = vector.load %arg5[%c0_9, %c0_10] : memref<1x64xf32, #tpu.memory_space<vmem>>, vector<1x64xf32>
    %13 = vector.broadcast %12 : vector<1x64xf32> to vector<8x64xf32>
    %14 = arith.addf %11, %13 : vector<8x64xf32>
    %cst_11 = arith.constant 0.00999999977 : f32
    %15 = vector.broadcast %cst_11 : f32 to vector<8x64xf32>
    %16 = arith.mulf %15, %14 : vector<8x64xf32>
    %17 = arith.maximumf %14, %16 : vector<8x64xf32>
    %18 = arith.truncf %17 : vector<8x64xf32> to vector<8x64xbf16>
    %c0_12 = arith.constant 0 : index
    %c0_13 = arith.constant 0 : index
    %19 = vector.load %arg6[%c0_12, %c0_13] : memref<64x128xbf16, #tpu.memory_space<vmem>>, vector<64x128xbf16>
    %cst_14 = arith.constant dense<0.000000e+00> : vector<8x128xf32>
    %20 = tpu.matmul %18, %19, %cst_14 {dimension_numbers = #tpu.dot_dimension_numbers<[1], [0], [0], [1], [0, 0, 1, 1], [], []>} : vector<8x64xbf16>, vector<64x128xbf16>, vector<8x128xf32> -> vector<8x128xf32>
    %c0_15 = arith.constant 0 : index
    %c0_16 = arith.constant 0 : index
    %21 = vector.load %arg7[%c0_15, %c0_16] : memref<1x128xf32, #tpu.memory_space<vmem>>, vector<1x128xf32>
    %22 = vector.broadcast %21 : vector<1x128xf32> to vector<8x128xf32>
    %23 = arith.addf %20, %22 : vector<8x128xf32>
    %cst_17 = arith.constant 0.00999999977 : f32
    %24 = vector.broadcast %cst_17 : f32 to vector<8x128xf32>
    %25 = arith.mulf %24, %23 : vector<8x128xf32>
    %26 = arith.maximumf %23, %25 : vector<8x128xf32>
    %27 = arith.truncf %26 : vector<8x128xf32> to vector<8x128xbf16>
    %c0_18 = arith.constant 0 : index
    %c0_19 = arith.constant 0 : index
    %28 = vector.load %arg8[%c0_18, %c0_19] : memref<128x256xbf16, #tpu.memory_space<vmem>>, vector<128x256xbf16>
    %cst_20 = arith.constant dense<0.000000e+00> : vector<8x256xf32>
    %29 = tpu.matmul %27, %28, %cst_20 {dimension_numbers = #tpu.dot_dimension_numbers<[1], [0], [0], [1], [0, 0, 1, 1], [], []>} : vector<8x128xbf16>, vector<128x256xbf16>, vector<8x256xf32> -> vector<8x256xf32>
    %c0_21 = arith.constant 0 : index
    %c0_22 = arith.constant 0 : index
    %30 = vector.load %arg9[%c0_21, %c0_22] : memref<1x256xf32, #tpu.memory_space<vmem>>, vector<1x256xf32>
    %31 = vector.broadcast %30 : vector<1x256xf32> to vector<8x256xf32>
    %32 = arith.addf %29, %31 : vector<8x256xf32>
    %cst_23 = arith.constant 0.00999999977 : f32
    %33 = vector.broadcast %cst_23 : f32 to vector<8x256xf32>
    %34 = arith.mulf %33, %32 : vector<8x256xf32>
    %35 = arith.maximumf %32, %34 : vector<8x256xf32>
    %36 = arith.truncf %35 : vector<8x256xf32> to vector<8x256xbf16>
    %c0_24 = arith.constant 0 : index
    %c0_25 = arith.constant 0 : index
    %37 = vector.load %arg10[%c0_24, %c0_25] : memref<256x256xbf16, #tpu.memory_space<vmem>>, vector<256x256xbf16>
    %cst_26 = arith.constant dense<0.000000e+00> : vector<8x256xf32>
    %38 = tpu.matmul %36, %37, %cst_26 {dimension_numbers = #tpu.dot_dimension_numbers<[1], [0], [0], [1], [0, 0, 1, 1], [], []>} : vector<8x256xbf16>, vector<256x256xbf16>, vector<8x256xf32> -> vector<8x256xf32>
    %c0_27 = arith.constant 0 : index
    %c0_28 = arith.constant 0 : index
    %39 = vector.load %arg11[%c0_27, %c0_28] : memref<1x256xf32, #tpu.memory_space<vmem>>, vector<1x256xf32>
    %40 = vector.broadcast %39 : vector<1x256xf32> to vector<8x256xf32>
    %41 = arith.addf %38, %40 : vector<8x256xf32>
    %cst_29 = arith.constant 0.000000e+00 : f32
    %42 = vector.broadcast %cst_29 : f32 to vector<8x256xf32>
    %43 = arith.maximumf %41, %42 : vector<8x256xf32>
    %c0_30 = arith.constant 0 : index
    %c0_31 = arith.constant 0 : index
    %44 = vector.load %arg12[%c0_30, %c0_31] : memref<1x256xf32, #tpu.memory_space<vmem>>, vector<1x256xf32>
    %45 = vector.broadcast %44 : vector<1x256xf32> to vector<8x256xf32>
    %46 = arith.mulf %43, %45 : vector<8x256xf32>
    %cst_32 = arith.constant dense<0.000000e+00> : vector<8xf32>
    %47 = vector.multi_reduction <add>, %46, %cst_32 [1] : vector<8x256xf32> to vector<8xf32>
    %48 = vector.shape_cast %47 : vector<8xf32> to vector<8x1xf32>
    %c0_33 = arith.constant 0 : index
    %c0_34 = arith.constant 0 : index
    %49 = vector.load %arg13[%c0_33, %c0_34] : memref<1x1xf32, #tpu.memory_space<vmem>>, vector<1x1xf32>
    %50 = vector.broadcast %49 : vector<1x1xf32> to vector<8x1xf32>
    %51 = arith.addf %48, %50 : vector<8x1xf32>
    %c0_35 = arith.constant 0 : index
    %c0_36 = arith.constant 0 : index
    %52 = vector.load %arg14[%c0_35, %c0_36] : memref<8x1xf32, #tpu.memory_space<vmem>>, vector<8x1xf32>
    tpu.vector_store %arg14[%c0_35, %c0_36], %51 {strides = array<i32>} : memref<8x1xf32, #tpu.memory_space<vmem>>, vector<8x1xf32>,
    return
  }
  func.func @transform_0(%arg0: i32) -> (i32, i32) {
    %c0_i32 = arith.constant 0 : i32
    %c0_i32_0 = arith.constant 0 : i32
    return %arg0, %c0_i32 : i32, i32
  }
  func.func @transform_1(%arg0: i32) -> (i32, i32) {
    %c0_i32 = arith.constant 0 : i32
    %c0_i32_0 = arith.constant 0 : i32
    %c0_i32_1 = arith.constant 0 : i32
    return %c0_i32, %c0_i32_0 : i32, i32
  }
  func.func @transform_2(%arg0: i32) -> (i32, i32) {
    %c0_i32 = arith.constant 0 : i32
    %c0_i32_0 = arith.constant 0 : i32
    %c0_i32_1 = arith.constant 0 : i32
    return %c0_i32, %c0_i32_0 : i32, i32
  }
  func.func @transform_3(%arg0: i32) -> (i32, i32) {
    %c0_i32 = arith.constant 0 : i32
    %c0_i32_0 = arith.constant 0 : i32
    %c0_i32_1 = arith.constant 0 : i32
    return %c0_i32, %c0_i32_0 : i32, i32
  }
  func.func @transform_4(%arg0: i32) -> (i32, i32) {
    %c0_i32 = arith.constant 0 : i32
    %c0_i32_0 = arith.constant 0 : i32
    %c0_i32_1 = arith.constant 0 : i32
    return %c0_i32, %c0_i32_0 : i32, i32
  }
  func.func @transform_5(%arg0: i32) -> (i32, i32) {
    %c0_i32 = arith.constant 0 : i32
    %c0_i32_0 = arith.constant 0 : i32
    %c0_i32_1 = arith.constant 0 : i32
    return %c0_i32, %c0_i32_0 : i32, i32
  }
  func.func @transform_6(%arg0: i32) -> (i32, i32) {
    %c0_i32 = arith.constant 0 : i32
    %c0_i32_0 = arith.constant 0 : i32
    %c0_i32_1 = arith.constant 0 : i32
    return %c0_i32, %c0_i32_0 : i32, i32
  }
  func.func @transform_7(%arg0: i32) -> (i32, i32) {
    %c0_i32 = arith.constant 0 : i32
    %c0_i32_0 = arith.constant 0 : i32
    %c0_i32_1 = arith.constant 0 : i32
    return %c0_i32, %c0_i32_0 : i32, i32
  }
  func.func @transform_8(%arg0: i32) -> (i32, i32) {
    %c0_i32 = arith.constant 0 : i32
    %c0_i32_0 = arith.constant 0 : i32
    %c0_i32_1 = arith.constant 0 : i32
    return %c0_i32, %c0_i32_0 : i32, i32
  }
  func.func @transform_9(%arg0: i32) -> (i32, i32) {
    %c0_i32 = arith.constant 0 : i32
    %c0_i32_0 = arith.constant 0 : i32
    %c0_i32_1 = arith.constant 0 : i32
    return %c0_i32, %c0_i32_0 : i32, i32
  }
  func.func @transform_10(%arg0: i32) -> (i32, i32) {
    %c0_i32 = arith.constant 0 : i32
    %c0_i32_0 = arith.constant 0 : i32
    %c0_i32_1 = arith.constant 0 : i32
    return %c0_i32, %c0_i32_0 : i32, i32
  }
  func.func @transform_11(%arg0: i32) -> (i32, i32) {
    %c0_i32 = arith.constant 0 : i32
    %c0_i32_0 = arith.constant 0 : i32
    %c0_i32_1 = arith.constant 0 : i32
    return %c0_i32, %c0_i32_0 : i32, i32
  }
  func.func @transform_12(%arg0: i32) -> (i32, i32) {
    %c0_i32 = arith.constant 0 : i32
    %c0_i32_0 = arith.constant 0 : i32
    %c0_i32_1 = arith.constant 0 : i32
    return %c0_i32, %c0_i32_0 : i32, i32
  }
  func.func @transform_13(%arg0: i32) -> (i32, i32) {
    %c0_i32 = arith.constant 0 : i32
    %c0_i32_0 = arith.constant 0 : i32
    return %arg0, %c0_i32 : i32, i32
  }
}

</mosaic_0001>

<bundles_post_ra>
// kernel: tpu_custom_call.1
= control target key start
LH: loop header
LB: loop body
LE: loop exit
PB: predicated region body
PF: predicated region fallthrough
CT: control target
= control target key end

     0   :  { %s1318_s0 = inlined_call_operand.hbm [shape: bf16[8,8], index: 0, kind: input, shape index: {}]   ;;  %s1319_s1 = inlined_call_operand.hbm [shape: bf16[8,32], index: 1, kind: input, shape index: {}]   ;;  %s1320_s2 = inlined_call_operand.hbm [shape: f32[1,32], index: 2, kind: input, shape index: {}]   ;;  %s1321_s3 = inlined_call_operand.hbm [shape: bf16[32,64], index: 3, kind: input, shape index: {}]   ;;  %s1322_s4 = inlined_call_operand.hbm [shape: f32[1,64], index: 4, kind: input, shape index: {}]   ;;  %s1323_s5 = inlined_call_operand.hbm [shape: bf16[64,128], index: 5, kind: input, shape index: {}]   ;;  %s1324_s6 = inlined_call_operand.vmem [shape: f32[1,128], index: 6, kind: input, shape index: {}]   ;;  %s1325_s7 = inlined_call_operand.hbm [shape: bf16[128,256], index: 7, kind: input, shape index: {}]   ;;  %s1326_s8 = inlined_call_operand.vmem [shape: f32[1,256], index: 8, kind: input, shape index: {}]   ;;  %s1327_s9 = inlined_call_operand.hbm [shape: bf16[256,256], index: 9, kind: input, shape index: {}]   ;;  %s1328_s10 = inlined_call_operand.vmem [shape: f32[1,256], index: 10, kind: input, shape index: {}]   ;;  %s1329_s11 = inlined_call_operand.vmem [shape: f32[1,256], index: 11, kind: input, shape index: {}]   ;;  %s1330_s12 = inlined_call_operand.<no memory space> [shape: f32[1,1], index: 12, kind: input, shape index: {}]   ;;  %s1331_s13 = inlined_call_operand.vmem [shape: f32[8,1], index: 13, kind: output, shape index: {}]  }
   0x1   :  { %v18_v0 = vstv %s1330_s12 }
   0x2   :  { %19 = vst [vmem:[#allocation2] sm:$0x1] %v18_v0 }
   0x3   :  { %20 = vsyncpa [#allocation4], 0 }
   0x4   :  { %21 = vsyncpa [#allocation6], 0 }
   0x5   :  { %22 = vsyncpa [#allocation9], 0 }
   0x6   :  { %23 = vsyncpa [#allocation12], 0  ;;  %s41_s29 = sshll.u32 %s1319_s1, 4  ;;  %s42_s29 = int_to_ptr.hbm [resolvable:$true] %s41_s29 }
   0x7   :  { %24 = vsyncpa [#allocation15], 0  ;;  %s1194_s30 = smov [#allocation5]   ;;  %s62_s17 = sshll.u32 %s1321_s3, 4  ;;  %s63_s17 = int_to_ptr.hbm [resolvable:$true] %s62_s17 }
   0x8   :  { %s43_s14 = sshll.u32 %s1194_s30, 4  ;;  %s1195_s12 = smov [#allocation8]   ;;  %s44_s14 = int_to_ptr.vmem [resolvable:$true] %s43_s14 }
   0x9   :  { %46 = dma.hbm_to_vmem [thread:$0]  %s42_s29, 64, %s44_s14, [#allocation6]  }
   0xa   :  { %s64_s18 = sshll.u32 %s1195_s12, 4  ;;  %s1196_s19 = smov 64   ;;  %s65_s18 = int_to_ptr.vmem [resolvable:$true] %s64_s18 }
   0xb   :  { %s1197_s20 = smov 4   ;;  %s86_s1 = sshll.u32 %s1323_s5, 4  ;;  %s87_s1 = int_to_ptr.hbm [resolvable:$true] %s86_s1 }
   0xc   :  { %70 = dma.hbm_to_vmem [thread:$0]  %s63_s17, 256, %s65_s18, [#allocation9], %s1196_s19, %s1196_s19, %s1197_s20  }
   0xd   :  { %s1198_s23 = smov [#allocation11]   ;;  %s30_s3 = sshll.u32 %s1318_s0, 4  ;;  %s31_s3 = int_to_ptr.hbm [resolvable:$true] %s30_s3 }
   0xe   :  { %s88_s24 = sshll.u32 %s1198_s23, 4  ;;  %s1199_s27 = smov [#allocation3]   ;;  %s89_s24 = int_to_ptr.vmem [resolvable:$true] %s88_s24 }
   0xf   :  { %94 = dma.hbm_to_vmem [thread:$0]  %s87_s1, 512, %s89_s24, [#allocation12], %s1196_s19, %s1196_s19, %s1197_s20  }
  0x10   :  { %s32_s28 = sshll.u32 %s1199_s27, 4  ;;  %s52_s14 = sshll.u32 %s1320_s2, 4  ;;  %s33_s28 = int_to_ptr.vmem [resolvable:$true] %s32_s28  ;;  %s53_s14 = int_to_ptr.hbm [resolvable:$true] %s52_s14 }
  0x11   :  { %35 = dma.hbm_to_vmem [thread:$0]  %s31_s3, 64, %s33_s28, [#allocation4]  }
  0x12   :  { %s76_s16 = sshll.u32 %s1322_s4, 4  ;;  %s1200_s17 = smov [#allocation7]   ;;  %s77_s16 = int_to_ptr.hbm [resolvable:$true] %s76_s16 }
  0x13   :  { %s54_s12 = sshll.u32 %s1200_s17, 4  ;;  %s1201_s0 = smov [#allocation10]   ;;  %s55_s12 = int_to_ptr.vmem [resolvable:$true] %s54_s12 }
  0x14   :  { %57 = dma.hbm_to_vmem [thread:$0]  %s53_s14, 16, %s55_s12, [#allocation6]  }
  0x15   :  { %s78_s18 = sshll.u32 %s1201_s0, 4  ;;  %s101_s21 = sshll.u32 %s1325_s7, 4  ;;  %s79_s18 = int_to_ptr.vmem [resolvable:$true] %s78_s18  ;;  %s102_s21 = int_to_ptr.hbm [resolvable:$true] %s101_s21 }
  0x16   :  { %81 = dma.hbm_to_vmem [thread:$0]  %s77_s16, 16, %s79_s18, [#allocation9]  }
  0x17   :  { %s1202_s2 = smov [#allocation13]   ;;  %s116_s4 = sshll.u32 %s1327_s9, 4  ;;  %s117_s4 = int_to_ptr.hbm [resolvable:$true] %s116_s4 }
  0x18   :  { %s103_s22 = sshll.u32 %s1202_s2, 4  ;;  %s1203_s24 = smov 128   ;;  %s104_s22 = int_to_ptr.vmem [resolvable:$true] %s103_s22 }
  0x19   :  { %s1204_s25 = smov 8   ;;  %s1205_s26 = smov [#allocation14]  }
  0x1a   :  { %109 = dma.hbm_to_vmem [thread:$0]  %s102_s21, 2048, %s104_s22, [#allocation12], %s1203_s24, %s1203_s24, %s1204_s25  }
  0x1b   :  { %s118_s3 = sshll.u32 %s1205_s26, 4  ;;  %s119_s3 = int_to_ptr.vmem [resolvable:$true] %s118_s3 }
  0x1c   :  { %124 = dma.hbm_to_vmem [thread:$0]  %s117_s4, 4096, %s119_s3, [#allocation15], %s1203_s24, %s1203_s24, %s1204_s25  }
  0x1d   :  { %1184 = dma.done.wait [#allocation4], 64  }
  0x1e   :  { %1185 = vsyncadd [#allocation4], 4294967232 }
  0x1f   :  { %1186 = dma.done.wait [#allocation6], 80  }
  0x20   :  { %1187 = vsyncadd [#allocation6], 4294967216 }
  0x21   :  { %1188 = dma.done.wait [#allocation9], 272  }
  0x22   :  { %1189 = vsyncadd [#allocation9], 4294967024 }
  0x23   :  { %1190 = dma.done.wait [#allocation12], 2560  }
  0x24   :  { %1191 = vsyncadd [#allocation12], 4294964736 }
  0x25   :  { %1192 = dma.done.wait [#allocation15], 4096  }
  0x26   :  { %1193 = vsyncadd [#allocation15], 4294963200  ;;  %vm174_vm0 = vcmask 1043456   ;;  %v165_v1 = vld [vmem:[#allocation5] sm:$0xf]  ;;  %v923_v2 = vld [vmem:[#allocation8 + $0x8] sm:$0xff] }
  0x27   :  { %v176_v3 = vsel %vm174_vm0, %v165_v1, 0  ;;  %v164_v4 = vld [vmem:[#allocation3] sm:$0xf]  ;;  %vm170_vm1 = vcmask 64512   ;;  %v922_v5 = vld [vmem:[#allocation8] sm:$0xff]  ;;  %v927_v6 = vld [vmem:[#allocation11 + $0x18] sm:$0xff] }
  0x28   :  { %185 = vmatpush.bf16.msra.mxu1 %v176_v3  ;;  %278 = vmatpush.bf16.msra.mxu2 %v927_v6  ;;  %v926_v7 = vld [vmem:[#allocation11 + $0x10] sm:$0xff]  ;;  %v988_v8 = vld [vmem:[#allocation7] ss:$0 sm:$0xff]  ;;  %vm214_vm2 = vcmask 261120   ;;  %v924_v16 = vld [vmem:[#allocation11] sm:$0xff]  ;;  %vm270_vm3 = vcmask 523264  }
  0x29   :  { %v925_v15 = vld [vmem:[#allocation11 + $0x8] sm:$0xff]  ;;  %v788_v17 = vld [vmem:[#allocation13 + $0x70] sm:$0xf]  ;;  %v943_v18 = vld [vmem:[#allocation13 + $0x74] sm:$0xf0]  ;;  %vm692_vm4 = vcmask 7168  }
  0x2a   :  { %v942_v19 = vld [vmem:[#allocation13 + $0x74] sm:$0xf]  ;;  %v789_v20 = vor.u32 %v943_v18, %v788_v17  ;;  %v790_v21 = vld [vmem:[#allocation13 + $0x78] sm:$0xf0]  ;;  %v780_v22 = vld [vmem:[#allocation13 + $0x60] sm:$0xf] }
  0x2b   :  { %703 = vmatmul.msk.bf16.vlgmr.msra.gmra.mxu1 %vm170_vm1, %v164_v4  ;;  %v941_v23 = vld [vmem:[#allocation13 + $0x64] sm:$0xf0]  ;;  %v793_v24 = vor.u32 %v942_v19, %v790_v21  ;;  %v940_v25 = vld [vmem:[#allocation13 + $0x64] sm:$0xf]  ;;  %v782_v26 = vld [vmem:[#allocation13 + $0x68] sm:$0xf0] }
  0x2c   :  { %224 = vmatpush.bf16.msrb.mxu1 %v923_v2  ;;  %279 = vmatpush.bf16.msra.mxu2 %v926_v7  ;;  %v781_v27 = vor.u32 %v941_v23, %v780_v22  ;;  %v785_v28 = vor.u32 %v940_v25, %v782_v26  ;;  %v772_v29 = vld [vmem:[#allocation13 + $0x50] sm:$0xf]  ;;  %v939_v30 = vld [vmem:[#allocation13 + $0x54] sm:$0xf0]  ;;  %v938_v31 = vld [vmem:[#allocation13 + $0x54] sm:$0xf] }
  0x2d   :  { %392 = vmatpush.bf16.msra.mxu3 %v789_v20  ;;  %405 = vmatpush.bf16.msra.mxu0 %v793_v24  ;;  %v774_v32 = vld [vmem:[#allocation13 + $0x58] sm:$0xf0]  ;;  %v773_v33 = vor.u32 %v939_v30, %v772_v29  ;;  %v764_v35 = vld [vmem:[#allocation13 + $0x40] sm:$0xf]  ;;  %v937_v36 = vld [vmem:[#allocation13 + $0x44] sm:$0xf0] }
  0x2e   :  { %v777_v34 = vor.u32 %v938_v31, %v774_v32  ;;  %v936_v37 = vld [vmem:[#allocation13 + $0x44] sm:$0xf]  ;;  %v766_v38 = vld [vmem:[#allocation13 + $0x48] sm:$0xf0]  ;;  %v765_v39 = vor.u32 %v937_v36, %v764_v35  ;;  %v756_v41 = vld [vmem:[#allocation13 + $0x30] sm:$0xf] }
  0x2f   :  { %v769_v40 = vor.u32 %v936_v37, %v766_v38  ;;  %v935_v42 = vld [vmem:[#allocation13 + $0x34] sm:$0xf0]  ;;  %v934_v43 = vld [vmem:[#allocation13 + $0x34] sm:$0xf]  ;;  %v758_v44 = vld [vmem:[#allocation13 + $0x38] sm:$0xf0] }
  0x30   :  { %225 = vmatpush.bf16.msrb.mxu1 %v922_v5  ;;  %280 = vmatpush.bf16.msra.mxu2 %v925_v15  ;;  %v757_v45 = vor.u32 %v935_v42, %v756_v41  ;;  %v761_v46 = vor.u32 %v934_v43, %v758_v44  ;;  %v748_v47 = vld [vmem:[#allocation13 + $0x20] sm:$0xf]  ;;  %v933_v48 = vld [vmem:[#allocation13 + $0x24] sm:$0xf0]  ;;  %v932_v49 = vld [vmem:[#allocation13 + $0x24] sm:$0xf] }
  0x31   :  { %393 = vmatpush.bf16.msra.mxu3 %v781_v27  ;;  %406 = vmatpush.bf16.msra.mxu0 %v785_v28  ;;  %v750_v50 = vld [vmem:[#allocation13 + $0x28] sm:$0xf0]  ;;  %v749_v51 = vor.u32 %v933_v48, %v748_v47  ;;  %v989_v52 = vld [vmem:[#allocation10] ss:$0 sm:$0xff]  ;;  %v740_v60 = vld [vmem:[#allocation13 + $0x10] sm:$0xf] }
  0x32   :  { %v753_v53 = vor.u32 %v932_v49, %v750_v50  ;;  %v931_v61 = vld [vmem:[#allocation13 + $0x14] sm:$0xf0]  ;;  %v930_v62 = vld [vmem:[#allocation13 + $0x14] sm:$0xf]  ;;  %v742_v0 = vld [vmem:[#allocation13 + $0x18] sm:$0xf0] }
  0x33   :  { %v741_v63 = vor.u32 %v931_v61, %v740_v60  ;;  %v745_v1 = vor.u32 %v930_v62, %v742_v0  ;;  %v732_v2 = vld [vmem:[#allocation13] sm:$0xf]  ;;  %v929_v3 = vld [vmem:[#allocation13 + $0x4] sm:$0xf0]  ;;  %v928_v4 = vld [vmem:[#allocation13 + $0x4] sm:$0xf] }
  0x34   :  { %281 = vmatpush.bf16.msra.mxu2 %v924_v16  ;;  %v733_v5 = vor.u32 %v929_v3, %v732_v2  ;;  %v734_v6 = vld [vmem:[#allocation13 + $0x8] sm:$0xf0]  ;;  %v972_v16 = vld [vmem:[#allocation14 + $0xe4] sm:$0xf]  ;;  %v852_v18 = vld [vmem:[#allocation14 + $0x70] sm:$0xf] }
  0x35   :  { %394 = vmatpush.bf16.msra.mxu3 %v773_v33  ;;  %407 = vmatpush.bf16.msra.mxu0 %v777_v34  ;;  %v737_v7 = vor.u32 %v928_v4, %v734_v6  ;;  %v910_v17 = vld [vmem:[#allocation14 + $0xe8] sm:$0xf0]  ;;  %v959_v20 = vld [vmem:[#allocation14 + $0x74] sm:$0xf0]  ;;  %v958_v21 = vld [vmem:[#allocation14 + $0x74] sm:$0xf] }
  0x36   :  { %v854_v22 = vld [vmem:[#allocation14 + $0x78] sm:$0xf0]  ;;  %v913_v23 = vor.u32 %v972_v16, %v910_v17  ;;  %v853_v24 = vor.u32 %v959_v20, %v852_v18  ;;  %v900_v26 = vld [vmem:[#allocation14 + $0xd0] sm:$0xf]  ;;  %v971_v27 = vld [vmem:[#allocation14 + $0xd4] sm:$0xf0] }
  0x37   :  { %v857_v25 = vor.u32 %v958_v21, %v854_v22  ;;  %v970_v28 = vld [vmem:[#allocation14 + $0xd4] sm:$0xf]  ;;  %v902_v29 = vld [vmem:[#allocation14 + $0xd8] sm:$0xf0]  ;;  %v844_v30 = vld [vmem:[#allocation14 + $0x60] sm:$0xf]  ;;  %v901_v35 = vor.u32 %v971_v27, %v900_v26 }
  0x38   :  { %v957_v31 = vld [vmem:[#allocation14 + $0x64] sm:$0xf0]  ;;  %622 = vmatpush.bf16.msra.mxu1 %v853_v24  ;;  %v956_v33 = vld [vmem:[#allocation14 + $0x64] sm:$0xf]  ;;  %v846_v34 = vld [vmem:[#allocation14 + $0x68] sm:$0xf0] }
  0x39   :  { %395 = vmatpush.bf16.msra.mxu3 %v765_v39  ;;  %408 = vmatpush.bf16.msra.mxu0 %v769_v40  ;;  %v845_v32 = vor.u32 %v957_v31, %v844_v30  ;;  %v849_v36 = vor.u32 %v956_v33, %v846_v34  ;;  %v892_v37 = vld [vmem:[#allocation14 + $0xc0] sm:$0xf]  ;;  %v969_v38 = vld [vmem:[#allocation14 + $0xc4] sm:$0xf0]  ;;  %v905_v39 = vor.u32 %v970_v28, %v902_v29  ;;  %v836_v40 = vld [vmem:[#allocation14 + $0x50] sm:$0xf] }
  0x3a   :  { %v955_v41 = vld [vmem:[#allocation14 + $0x54] sm:$0xf0]  ;;  %v954_v42 = vld [vmem:[#allocation14 + $0x54] sm:$0xf]  ;;  %v968_v43 = vld [vmem:[#allocation14 + $0xc4] sm:$0xf]  ;;  %v893_v49 = vor.u32 %v969_v38, %v892_v37 }
  0x3b   :  { %v894_v44 = vld [vmem:[#allocation14 + $0xc8] sm:$0xf0]  ;;  %v828_v48 = vld [vmem:[#allocation14 + $0x40] sm:$0xf]  ;;  %v953_v50 = vld [vmem:[#allocation14 + $0x44] sm:$0xf0] }
  0x3c   :  { %623 = vmatpush.bf16.msra.mxu1 %v845_v32  ;;  %v876_v62 = vld [vmem:[#allocation14 + $0xa0] sm:$0xf]  ;;  %v964_v0 = vld [vmem:[#allocation14 + $0xa4] sm:$0xf]  ;;  %v868_v17 = vld [vmem:[#allocation14 + $0x90] sm:$0xf] }
  0x3d   :  { %396 = vmatpush.bf16.msra.mxu3 %v757_v45  ;;  %409 = vmatpush.bf16.msra.mxu0 %v761_v46  ;;  %v838_v45 = vld [vmem:[#allocation14 + $0x58] sm:$0xf0]  ;;  %v837_v46 = vor.u32 %v955_v41, %v836_v40  ;;  %v990_v3 = vld [vmem:[%s1324_s6] ss:$0 sm:$0xff]  ;;  %v963_v18 = vld [vmem:[#allocation14 + $0x94] sm:$0xf0] }
  0x3e   :  { %v841_v47 = vor.u32 %v954_v42, %v838_v45  ;;  %v869_v20 = vor.u32 %v963_v18, %v868_v17  ;;  %v870_v21 = vld [vmem:[#allocation14 + $0x98] sm:$0xf0]  ;;  %v949_v24 = vld [vmem:[#allocation14 + $0x24] sm:$0xf0]  ;;  %v814_v27 = vld [vmem:[#allocation14 + $0x28] sm:$0xf0] }
  0x3f   :  { %v860_v29 = vld [vmem:[#allocation14 + $0x80] sm:$0xf]  ;;  %v961_v30 = vld [vmem:[#allocation14 + $0x84] sm:$0xf0]  ;;  %v960_v31 = vld [vmem:[#allocation14 + $0x84] sm:$0xf] }
  0x40   :  { %624 = vmatpush.bf16.msra.mxu1 %v837_v46  ;;  %v861_v32 = vor.u32 %v961_v30, %v860_v29  ;;  %v862_v33 = vld [vmem:[#allocation14 + $0x88] sm:$0xf0]  ;;  %v946_v38 = vld [vmem:[#allocation14 + $0x14] sm:$0xf]  ;;  %v796_v41 = vld [vmem:[#allocation14] sm:$0xf] }
  0x41   :  { %397 = vmatpush.bf16.msra.mxu3 %v749_v51  ;;  %410 = vmatpush.bf16.msra.mxu0 %v753_v53  ;;  %v952_v51 = vld [vmem:[#allocation14 + $0x44] sm:$0xf]  ;;  %v897_v53 = vor.u32 %v968_v43, %v894_v44  ;;  %v865_v34 = vor.u32 %v960_v31, %v862_v33  ;;  %v945_v42 = vld [vmem:[#allocation14 + $0x4] sm:$0xf0]  ;;  %v798_v45 = vld [vmem:[#allocation14 + $0x8] sm:$0xf0] }
  0x42   :  { %v944_v43 = vld [vmem:[#allocation14 + $0x4] sm:$0xf]  ;;  %v797_v44 = vor.u32 %v945_v42, %v796_v41 }
  0x43   :  { %v801_v46 = vor.u32 %v944_v43, %v798_v45 }
  0x45   :  { %398 = vmatpush.bf16.msra.mxu3 %v741_v63  ;;  %411 = vmatpush.bf16.msra.mxu0 %v745_v1  ;;  %v965_v63 = vld [vmem:[#allocation14 + $0xa4] sm:$0xf0]  ;;  %v878_v1 = vld [vmem:[#allocation14 + $0xa8] sm:$0xf0] }
  0x46   :  { %v877_v2 = vor.u32 %v965_v63, %v876_v62  ;;  %v881_v4 = vor.u32 %v964_v0, %v878_v1  ;;  %v456_v63 = vld [vmem:[%s1328_s10] sm:$0x3] }
  0x47   :  { %v458_v0 = vperm.slane %v456_v63, 0 }
  0x49   :  { %399 = vmatpush.bf16.msra.mxu3 %v733_v5  ;;  %412 = vmatpush.bf16.msra.mxu0 %v737_v7 }
  0x4d   :  { %648 = vmatpush.bf16.msrb.mxu3 %v857_v25  ;;  %v948_v25 = vld [vmem:[#allocation14 + $0x24] sm:$0xf] }
  0x4e   :  { %v817_v28 = vor.u32 %v948_v25, %v814_v27 }
  0x51   :  { %649 = vmatpush.bf16.msrb.mxu3 %v849_v36  ;;  %v947_v36 = vld [vmem:[#allocation14 + $0x14] sm:$0xf0] }
  0x55   :  { %650 = vmatpush.bf16.msrb.mxu3 %v841_v47  ;;  %v306_v47 = vld [vmem:[%s1326_s8] sm:$0x3] }
  0xa8   :  { %v187_v9 = vpop.f32.mrf.mxu1 }
  0xa9   :  { %v188_v10 = vadd.f32 %v988_v8, %v187_v9  ;;  %v916_v8 = vld [vmem:[#allocation14 + $0xf0] sm:$0xf]  ;;  %v975_v9 = vld [vmem:[#allocation14 + $0xf4] sm:$0xf0] }
  0xab   :  { %v191_v11 = vmul.f32 0.01, %v188_v10 }
  0xad   :  { %v192_v12 = vmax.f32 %v188_v10, %v191_v11  ;;  %v974_v10 = vld [vmem:[#allocation14 + $0xf4] sm:$0xf]  ;;  %v917_v11 = vor.u32 %v975_v9, %v916_v8 }
  0xaf   :  { %v193_v13 = vpack.c.bf16 %v192_v12, %v192_v12  ;;  %v918_v12 = vld [vmem:[#allocation14 + $0xf8] sm:$0xf0]  ;;  %635 = vmatpush.bf16.msrb.mxu2 %v917_v11  ;;  %v820_v11 = vld [vmem:[#allocation14 + $0x30] sm:$0xf] }
  0xb0   :  { %v189_v14 = vpop.f32.mrf.mxu1  ;;  %v921_v15 = vor.u32 %v974_v10, %v918_v12  ;;  %v951_v12 = vld [vmem:[#allocation14 + $0x34] sm:$0xf0] }
  0xb1   :  { %712 = vmatmul.msk.bf16.vlgmr.msrb.gmra.mxu1 %vm214_vm2, %v193_v13  ;;  %v908_v13 = vld [vmem:[#allocation14 + $0xe0] sm:$0xf]  ;;  %v973_v14 = vld [vmem:[#allocation14 + $0xe4] sm:$0xf0] }
  0xb2   :  { %v909_v19 = vor.u32 %v973_v14, %v908_v13  ;;  %661 = vmatpush.bf16.msrb.mxu0 %v921_v15  ;;  %v950_v13 = vld [vmem:[#allocation14 + $0x34] sm:$0xf]  ;;  %v821_v14 = vor.u32 %v951_v12, %v820_v11  ;;  %v822_v15 = vld [vmem:[#allocation14 + $0x38] sm:$0xf0] }
  0xb3   :  { %v825_v16 = vor.u32 %v950_v13, %v822_v15 }
  0xb4   :  { %636 = vmatpush.bf16.msrb.mxu2 %v909_v19  ;;  %v962_v19 = vld [vmem:[#allocation14 + $0x94] sm:$0xf] }
  0xb5   :  { %v873_v22 = vor.u32 %v962_v19, %v870_v21  ;;  %v991_v21 = vld [vmem:[#allocation2] ss:$0 sm:$0xff] }
  0xb6   :  { %662 = vmatpush.bf16.msrb.mxu0 %v913_v23  ;;  %v812_v23 = vld [vmem:[#allocation14 + $0x20] sm:$0xf] }
  0xb7   :  { %v813_v26 = vor.u32 %v949_v24, %v812_v23 }
  0xb8   :  { %637 = vmatpush.bf16.msrb.mxu2 %v901_v35  ;;  %v804_v35 = vld [vmem:[#allocation14 + $0x10] sm:$0xf] }
  0xb9   :  { %v805_v37 = vor.u32 %v947_v36, %v804_v35 }
  0xba   :  { %663 = vmatpush.bf16.msrb.mxu0 %v905_v39  ;;  %v806_v39 = vld [vmem:[#allocation14 + $0x18] sm:$0xf0] }
  0xbb   :  { %v809_v40 = vor.u32 %v946_v38, %v806_v39 }
  0xbc   :  { %638 = vmatpush.bf16.msrb.mxu2 %v893_v49 }
  0xbe   :  { %664 = vmatpush.bf16.msrb.mxu0 %v897_v53 }
 0x12e   :  { %v227_v54 = vpop.f32.mrf.mxu1 }
 0x12f   :  { %v228_v55 = vadd.f32 %v989_v52, %v227_v54  ;;  %v830_v52 = vld [vmem:[#allocation14 + $0x48] sm:$0xf0]  ;;  %v884_v54 = vld [vmem:[#allocation14 + $0xb0] sm:$0xf] }
 0x131   :  { %v231_v56 = vmul.f32 0.01, %v228_v55 }
 0x133   :  { %v232_v57 = vmax.f32 %v228_v55, %v231_v56  ;;  %v967_v55 = vld [vmem:[#allocation14 + $0xb4] sm:$0xf0]  ;;  %v966_v56 = vld [vmem:[#allocation14 + $0xb4] sm:$0xf] }
 0x134   :  { %v885_v60 = vor.u32 %v967_v55, %v884_v54 }
 0x135   :  { %v233_v58 = vpack.c.bf16 %v232_v57, %v232_v57  ;;  %v886_v57 = vld [vmem:[#allocation14 + $0xb8] sm:$0xf0] }
 0x136   :  { %v229_v59 = vpop.f32.mrf.mxu1  ;;  %v889_v61 = vor.u32 %v966_v56, %v886_v57  ;;  %639 = vmatpush.bf16.msrb.mxu2 %v885_v60 }
 0x137   :  { %729 = vmatmul.msk.bf16.vlgmr.msra.gmra.mxu2 %vm270_vm3, %v233_v58  ;;  %v829_v58 = vor.u32 %v953_v50, %v828_v48  ;;  %v833_v59 = vor.u32 %v952_v51, %v830_v52  ;;  %v309_v48 = vperm.slane %v306_v47, 1  ;;  %v308_v52 = vperm.slane %v306_v47, 0 }
 0x138   :  { %665 = vmatpush.bf16.msrb.mxu0 %v889_v61 }
 0x139   :  { %625 = vmatpush.bf16.msra.mxu1 %v829_v58  ;;  %651 = vmatpush.bf16.msrb.mxu3 %v833_v59 }
 0x13a   :  { %640 = vmatpush.bf16.msrb.mxu2 %v877_v2 }
 0x13c   :  { %666 = vmatpush.bf16.msrb.mxu0 %v881_v4 }
 0x13d   :  { %626 = vmatpush.bf16.msra.mxu1 %v821_v14  ;;  %652 = vmatpush.bf16.msrb.mxu3 %v825_v16 }
 0x13e   :  { %641 = vmatpush.bf16.msrb.mxu2 %v869_v20 }
 0x140   :  { %667 = vmatpush.bf16.msrb.mxu0 %v873_v22 }
 0x141   :  { %627 = vmatpush.bf16.msra.mxu1 %v813_v26  ;;  %653 = vmatpush.bf16.msrb.mxu3 %v817_v28 }
 0x142   :  { %642 = vmatpush.bf16.msrb.mxu2 %v861_v32 }
 0x144   :  { %668 = vmatpush.bf16.msrb.mxu0 %v865_v34 }
 0x145   :  { %628 = vmatpush.bf16.msra.mxu1 %v805_v37  ;;  %654 = vmatpush.bf16.msrb.mxu3 %v809_v40 }
 0x149   :  { %629 = vmatpush.bf16.msra.mxu1 %v797_v44  ;;  %655 = vmatpush.bf16.msrb.mxu3 %v801_v46 }
 0x1ba   :  { %v283_v5 = vpop.f32.mrf.mxu2 }
 0x1bb   :  { %v284_v6 = vadd.f32 %v990_v3, %v283_v5  ;;  %v459_v5 = vperm.slane %v456_v63, 1 }
 0x1bd   :  { %v287_v7 = vmul.f32 0.01, %v284_v6 }
 0x1bf   :  { %v288_v8 = vmax.f32 %v284_v6, %v287_v7 }
 0x1c1   :  { %v289_v9 = vpack.c.bf16 %v288_v8, %v288_v8  ;;  %v676_v8 = vld [vmem:[%s1329_s11] sm:$0x3] }
 0x1c2   :  { %v285_v10 = vpop.f32.mrf.mxu2  ;;  %v678_v14 = vperm.slane %v676_v8, 0  ;;  %v679_v15 = vperm.slane %v676_v8, 1 }
 0x1c3   :  { %400 = vmatmul.bf16.vlgmr.msra.gmra.mxu3 %v289_v9  ;;  %413 = vmatmul.bf16.vlgmr.msra.gmra.mxu0 %v289_v9 }
 0x240   :  { %v414_v49 = vpop.f32.mrf.mxu0 }
 0x241   :  { %v415_v50 = vadd.f32 %v414_v49, %v309_v48 }
 0x243   :  { %v419_v51 = vmul.f32 0.01, %v415_v50 }
 0x245   :  { %v421_v53 = vmax.f32 %v415_v50, %v419_v51 }
 0x246   :  { %v401_v54 = vpop.f32.mrf.mxu3 }
 0x247   :  { %v423_v55 = vpack.c.bf16 %v421_v53, %v421_v53  ;;  %v402_v56 = vadd.f32 %v401_v54, %v308_v52 }
 0x248   :  { %v416_v57 = vpop.f32.mrf.mxu0 }
 0x249   :  { %v418_v58 = vmul.f32 0.01, %v402_v56  ;;  %643 = vmatmul.bf16.vlgmr.msrb.gmra.mxu2 %v423_v55  ;;  %669 = vmatmul.bf16.vlgmr.msrb.gmra.mxu0 %v423_v55 }
 0x24b   :  { %v420_v59 = vmax.f32 %v402_v56, %v418_v58 }
 0x24d   :  { %v422_v60 = vpack.c.bf16 %v420_v59, %v420_v59 }
 0x24e   :  { %v403_v61 = vpop.f32.mrf.mxu3 }
 0x24f   :  { %630 = vmatmul.bf16.vlgmr.msra.gmra.mxu1 %v422_v60  ;;  %656 = vmatmul.bf16.vlgmr.msrb.gmra.mxu3 %v422_v60 }
 0x2c6   :  { %v670_v62 = vpop.f32.mrf.mxu0 }
 0x2cc   :  { %v631_v1 = vpop.f32.mrf.mxu1  ;;  %v644_v2 = vpop.f32.mrf.mxu2 }
 0x2cd   :  { %v632_v3 = vadd.f32 %v631_v1, %v458_v0 }
 0x2ce   :  { %v672_v4 = vpop.f32.mrf.mxu0 }
 0x2cf   :  { %v645_v6 = vadd.f32 %v644_v2, %v632_v3 }
 0x2d1   :  { %v674_v12 = vmax.f32 %v645_v6, 0.0 }
 0x2d2   :  { %v657_v7 = vpop.f32.mrf.mxu3 }
 0x2d3   :  { %v658_v9 = vadd.f32 %v657_v7, %v459_v5  ;;  %v682_v17 = vmul.f32 %v678_v14, %v674_v12 }
 0x2d4   :  { %v633_v10 = vpop.f32.mrf.mxu1  ;;  %v646_v11 = vpop.f32.mrf.mxu2 }
 0x2d5   :  { %v671_v13 = vadd.f32 %v670_v62, %v658_v9 }
 0x2d7   :  { %v675_v16 = vmax.f32 %v671_v13, 0.0 }
 0x2d9   :  { %v683_v18 = vmul.f32 %v679_v15, %v675_v16 }
 0x2da   :  { %v659_v19 = vpop.f32.mrf.mxu3 }
 0x2db   :  { %v684_v20 = vadd.f32 %v683_v18, %v682_v17 }
 0x2dd   :  { %685 = vadd.xlane.f32.xlu0 %v684_v20 }
 0x350   :  { %v686_v22 = vpop.xlane.xlu0 %685 }
 0x351   :  { %v691_v23 = vadd.f32 %v991_v21, %v686_v22 }
 0x353   :  { %693 = vst.msk [vmem:[%s1331_s13] sm:$0xff] %vm692_vm4, %v691_v23 }
 0x354   :  { %698 = vsyncpa [#allocation4], 1 }
 0x355   :  { %699 = vsyncpa [#allocation6], 1 }
 0x356   :  { %700 = vsyncpa [#allocation9], 1 }
 0x357   :  { %701 = vsyncpa [#allocation12], 1 }
 0x358   :  { %702 = vsyncpa [#allocation15], 1 }

</bundles_post_ra>
